<compile_context>
chip_gen: v6e
topology: v6e:2x2x1
jax: 0.10.0
libtpu: 0.0.40
codegen_flags: <defaults>
</compile_context>

<pallas_src>
import functools
import numpy as np

import jax
import jax.numpy as jnp
from jax import lax
from jax.experimental import pallas as pl
from jax.experimental.pallas import tpu as pltpu


_NEG = -1e30      # finite "-inf" pad for softmax logits (exp underflows to 0)
_LANE = 128


def _pad_to_lane(d):
    return ((d + _LANE - 1) // _LANE) * _LANE


# --------------------------------------------------------------------------
# Fused kernel: merged (lava|cls) DINO cross terms + supervised CE + cosine
# hinge + both EMA center updates, in one invocation.
#
# Slab A (pad -1e30), width W:
#   rows [0, 2*tb)                    teacher chunks 0,1; each chunk = B lava
#                                     rows then B cls rows (tb = 2*B)
#   rows [2*tb, (2+n_crops)*tb)       student crops, same (lava|cls) layout
#   rows [(2+n_crops)*tb, ... + Bl)   labeled-chunk student cls logits
# Slab B (pad 0), width W:
#   rows [0, Bl)        one-hot labels
#   rows [Bl, 2*Bl)     semantic predictions
#   rows [2*Bl, 3*Bl)   semantic targets (emb_matrix[labels])
#   row  3*Bl           center (lava), row 3*Bl+1 center_class (cls)
# Output (3, W): row 0 lanes 0..4 = [lava_w, pl_w, sup_w, sem_w, total],
#   row 1 = new center (lava), row 2 = new center_class.
# --------------------------------------------------------------------------
def _lava_fused_kernel(params_ref, slab_a_ref, slab_b_ref, out_ref,
                       *, n_crops, bsz, bl, d_lava, d_cls, margin):
    # SMEM params (all scales precomputed host-side):
    inv_t = params_ref[0]          # 1 / teacher_temp
    inv_s = params_ref[1]          # 1 / student_temp
    scale_lava = params_ref[2]     # lambda_dino / (n_terms * B)
    scale_pl = params_ref[3]       # lambda_pl   / (n_terms * B)
    scale_sup = params_ref[4]      # lambda_sup  / Bl
    scale_sem = params_ref[5]      # lambda_sem  / Bl
    momentum = params_ref[6]       # center momentum
    c_scale = params_ref[7]        # (1 - momentum) / (2 * B)

    W = slab_a_ref.shape[-1]
    tb = 2 * bsz                   # merged (lava|cls) rows per chunk / crop
    s_base = 2 * tb                # student rows start after the 2 teacher chunks
    sup_base = s_base + n_crops * tb

    # Selectors, built once (JAX does not CSE broadcast/iota across unrolls).
    row = lax.broadcasted_iota(jnp.int32, (tb, 1), 0)
    is_lava_row = row < bsz                                   # (tb, 1)
    lane = lax.broadcasted_iota(jnp.int32, (1, W), 1)         # (1, W)

    # Per-row merged center block (lava rows get center, cls rows center_class).
    c_lava = slab_b_ref[3 * bl:3 * bl + 1, :]                 # (1, W), 0-padded
    c_cls = slab_b_ref[3 * bl + 1:3 * bl + 2, :]              # (1, W), 0-padded
    center_block = jnp.where(is_lava_row,
                             jnp.broadcast_to(c_lava, (tb, W)),
                             jnp.broadcast_to(c_cls, (tb, W)))

    # ---- teacher softmax q per chunk (exact division) + raw sums for the EMA
    # center updates (loss uses the OLD centers, matching the PyTorch module).
    qs = []
    t_lava_sum = jnp.zeros((1, W), jnp.float32)
    t_cls_sum = jnp.zeros((1, W), jnp.float32)
    for iq in range(2):
        t = slab_a_ref[iq * tb:(iq + 1) * tb, :]              # (tb, W)
        tq = (t - center_block) * inv_t
        mq = jnp.max(tq, axis=-1, keepdims=True)
        eq = jnp.exp(tq - mq)
        qs.append(eq / jnp.sum(eq, axis=-1, keepdims=True))   # exact softmax
        tl = jnp.where(is_lava_row, t, 0.0)
        t_lava_sum = t_lava_sum + jnp.sum(tl, axis=0, keepdims=True)
        t_cls_sum = t_cls_sum + jnp.sum(t - tl, axis=0, keepdims=True)

    # ---- DINO cross terms, student-crop OUTER / teacher-chunk inner.
    # sum(-q * log_softmax(s)) == logsumexp(s) - sum(q * s); lse computed once
    # per crop, per-row CE accumulated raw, single scale applied at the end.
    inv_s_blk = jnp.full((tb, W), inv_s, jnp.float32)         # hoisted broadcast
    ce_acc = jnp.zeros((tb, 1), jnp.float32)
    for v in range(n_crops):
        sv = slab_a_ref[s_base + v * tb:s_base + (v + 1) * tb, :] * inv_s_blk
        mv = jnp.max(sv, axis=-1, keepdims=True)
        lse_v = mv + jnp.log(jnp.sum(jnp.exp(sv - mv), axis=-1, keepdims=True))
        for iq in range(2):
            if iq == v:                                       # skipped pair
                continue
            ce_acc = ce_acc + (lse_v - jnp.sum(qs[iq] * sv, axis=-1,
                                               keepdims=True))

    ce_lava = jnp.sum(jnp.where(is_lava_row, ce_acc, 0.0), keepdims=True)  # (1,1)
    ce_all = jnp.sum(ce_acc, keepdims=True)
    lava_w = ce_lava * scale_lava
    pl_w = (ce_all - ce_lava) * scale_pl

    # ---- supervised CE on the labeled chunk: CE = logsumexp(x) - x[row, label]
    x = slab_a_ref[sup_base:sup_base + bl, :] * inv_s          # (Bl, W)
    mx = jnp.max(x, axis=-1, keepdims=True)
    lse_x = mx + jnp.log(jnp.sum(jnp.exp(x - mx), axis=-1, keepdims=True))
    onehot = slab_b_ref[0:bl, :]
    ce_sup = lse_x - jnp.sum(onehot * x, axis=-1, keepdims=True)
    sup_w = jnp.sum(ce_sup, keepdims=True) * scale_sup

    # ---- cosine hinge: mean(relu(margin - cos(pred, target)))
    # TODO(synk): MyHingeLoss is undefined in the provided source; standard
    # cosine hinge mean(relu(margin - cos)) with margin=0.4 is assumed.
    p = slab_b_ref[bl:2 * bl, :]
    tg = slab_b_ref[2 * bl:3 * bl, :]
    dot = jnp.sum(p * tg, axis=-1, keepdims=True)
    pn = jnp.maximum(jnp.sqrt(jnp.sum(p * p, axis=-1, keepdims=True)), 1e-8)
    tn = jnp.maximum(jnp.sqrt(jnp.sum(tg * tg, axis=-1, keepdims=True)), 1e-8)
    cos = dot * pl.reciprocal(pn * tn, approx=True)            # EUP slot
    hinge = jnp.maximum(margin - cos, 0.0)
    sem_w = jnp.sum(hinge, keepdims=True) * scale_sem

    total = lava_w + pl_w + sup_w + sem_w

    # ---- EMA center updates; pad lanes explicitly masked to 0.
    # TODO(synk): torch.distributed all_reduce omitted — single device assumed.
    new_c_lava = c_lava * momentum + jnp.where(lane < d_lava,
                                               t_lava_sum * c_scale, 0.0)
    new_c_cls = c_cls * momentum + jnp.where(lane < d_cls,
                                             t_cls_sum * c_scale, 0.0)

    # ---- single lane-dense (3, W) output slab.
    loss_row = (jnp.where(lane == 0, lava_w, 0.0)
                + jnp.where(lane == 1, pl_w, 0.0)
                + jnp.where(lane == 2, sup_w, 0.0)
                + jnp.where(lane == 3, sem_w, 0.0)
                + jnp.where(lane == 4, total, 0.0))
    out_ref[...] = jnp.concatenate([loss_row, new_c_lava, new_c_cls], axis=0)


def lava_fused_call(params, slab_a, slab_b, *, n_crops, bsz, bl,
                    d_lava, d_cls, margin, width):
    kernel = functools.partial(
        _lava_fused_kernel, n_crops=n_crops, bsz=bsz, bl=bl,
        d_lava=d_lava, d_cls=d_cls, margin=float(margin))
    # TODO(synk): for realistic DINO head dims (4k-65k) add a grid over the
    # crop/teacher-chunk axis with proper block_shapes (and vmem_limit_bytes)
    # instead of whole-array VMEM residency; at these KB sizes one grid-less
    # call is launch/DMA-latency bound and optimal.
    return pl.pallas_call(
        kernel,
        out_shape=jax.ShapeDtypeStruct((3, width), jnp.float32),
        in_specs=[pl.BlockSpec(memory_space=pltpu.MemorySpace.SMEM),
                  pl.BlockSpec(memory_space=pltpu.MemorySpace.VMEM),
                  pl.BlockSpec(memory_space=pltpu.MemorySpace.VMEM)],
        out_specs=pl.BlockSpec(memory_space=pltpu.MemorySpace.VMEM),
    )(params, slab_a, slab_b)


# --------------------------------------------------------------------------
# LAVALoss module (JAX / Pallas version)
# --------------------------------------------------------------------------
def _split_stack(x, split_map):
    """split by split_map, drop the last (labeled) chunk, stack -> (V, B, D)."""
    offsets = np.cumsum(split_map)[:-1]
    chunks = jnp.split(x, offsets)[:-1]
    sizes = {c.shape[0] for c in chunks}
    assert len(sizes) == 1, "unlabeled crops must have equal batch size"
    return jnp.stack(chunks)


class LAVALossPallas:
    def __init__(self, out_dim, ncrops, warmup_teacher_temp, teacher_temp,
                 warmup_teacher_temp_epochs, nepochs, num_classes, emb_matrix,
                 student_temp=0.1, center_momentum=0.9,
                 student_classifier_temp=0.1,
                 lambda_dino=1.0, lambda_sup=1.0, lambda_pl=1.0, lambda_sem=1.0):
        self.student_temp = float(student_temp)
        self.center_momentum = float(center_momentum)
        self.ncrops = ncrops
        self.center = jnp.zeros((1, out_dim), jnp.float32)
        self.center_class = jnp.zeros((1, num_classes), jnp.float32)
        self.lambda_dino = float(lambda_dino)
        self.lambda_sup = float(lambda_sup)
        self.lambda_pl = float(lambda_pl)
        self.lambda_sem = float(lambda_sem)
        self.teacher_temp_schedule = np.concatenate((
            np.linspace(warmup_teacher_temp, teacher_temp,
                        warmup_teacher_temp_epochs),
            np.ones(nepochs - warmup_teacher_temp_epochs) * teacher_temp))
        # Stored-but-unused, exactly like the original PyTorch module (forward
        # uses self.student_temp for the classifier head as well).
        self.student_classifier_temp = float(student_classifier_temp)
        self.emb_matrix = jnp.asarray(emb_matrix, jnp.float32)

    def __call__(self, student_lava_output, teacher_lava_output,
                 student_cls_output, teacher_cls_output,
                 student_sem_output, teacher_sem_output,
                 labels, split_map, epoch):
        # TODO(synk): forward-only; wrap in jax.custom_vjp (falling back to the
        # pure-JAX reference) before using under jax.grad for training.
        teacher_temp = float(self.teacher_temp_schedule[epoch])
        offsets = np.cumsum(split_map)[:-1]

        d_lava = teacher_lava_output.shape[-1]
        d_cls = teacher_cls_output.shape[-1]
        d_emb = self.emb_matrix.shape[-1]
        W = max(_pad_to_lane(d_lava), _pad_to_lane(d_cls), _pad_to_lane(d_emb))

        crops_lava = _split_stack(student_lava_output, split_map)  # (V, B, D1)
        crops_cls = _split_stack(student_cls_output, split_map)    # (V, B, D2)
        n_crops, B, _ = crops_lava.shape
        t_lava = teacher_lava_output.reshape(2, -1, d_lava)        # (2, B, D1)
        t_cls = teacher_cls_output.reshape(2, -1, d_cls)           # (2, B, D2)
        assert t_lava.shape[1] == B, "teacher chunk batch must match crop batch"

        cls_sup = jnp.split(student_cls_output, offsets)[-1]       # (Bl, D2)
        sem_pred = jnp.split(student_sem_output, offsets)[-1]      # (Bl, De)
        sem_tgt = self.emb_matrix[labels]                          # (Bl, De)
        Bl = cls_sup.shape[0]

        def padW(x, val):
            d = x.shape[-1]
            if d == W:
                return x
            cfg = [(0, 0)] * (x.ndim - 1) + [(0, W - d)]
            return jnp.pad(x, cfg, constant_values=val)

        # Slab A: -1e30-padded logits (teacher chunks, student crops, labeled).
        teacher_rows = jnp.concatenate(
            [padW(t_lava, _NEG), padW(t_cls, _NEG)], axis=1).reshape(4 * B, W)
        student_rows = jnp.concatenate(
            [padW(crops_lava, _NEG), padW(crops_cls, _NEG)],
            axis=1).reshape(n_crops * 2 * B, W)
        slab_a = jnp.concatenate(
            [teacher_rows, student_rows, padW(cls_sup, _NEG)], axis=0)

        # Slab B: 0-padded (onehot, sem pred, sem target, both centers).
        onehot = jax.nn.one_hot(labels, W, dtype=jnp.float32)      # (Bl, W)
        slab_b = jnp.concatenate(
            [onehot, padW(sem_pred, 0.0), padW(sem_tgt, 0.0),
             padW(self.center, 0.0), padW(self.center_class, 0.0)], axis=0)

        n_terms = 2 * n_crops - min(2, n_crops)
        params = jnp.asarray(
            [1.0 / teacher_temp,
             1.0 / self.student_temp,
             self.lambda_dino / (n_terms * B),
             self.lambda_pl / (n_terms * B),
             self.lambda_sup / Bl,
             self.lambda_sem / Bl,
             self.center_momentum,
             (1.0 - self.center_momentum) / (2 * B)],
            dtype=jnp.float32)

        out = lava_fused_call(params, slab_a, slab_b,
                              n_crops=n_crops, bsz=B, bl=Bl,
                              d_lava=d_lava, d_cls=d_cls, margin=0.4, width=W)

        # centers were EMA-updated inside the kernel (loss used the OLD center)
        self.center = out[1:2, :d_lava]
        self.center_class = out[2:3, :d_cls]

        lava_loss = out[0, 0]
        pl_loss = out[0, 1]
        sup_loss = out[0, 2]
        sem_loss = out[0, 3]
        total_loss = out[0, 4]

        # Device scalars — no float()/item() host syncs (the original `> 1e-6`
        # filter forces a blocking transfer; callers can apply it when logging).
        loss_stats = {'loss_lava': lava_loss, 'loss_sup': sup_loss,
                      'loss_pl': pl_loss, 'loss_sem': sem_loss}
        return total_loss, loss_stats


# --------------------------------------------------------------------------
# Pure-JAX reference (same math, no Pallas) for a correctness check.
# --------------------------------------------------------------------------
def _softmax(x):
    m = jnp.max(x, axis=-1, keepdims=True)
    e = jnp.exp(x - m)
    return e / jnp.sum(e, axis=-1, keepdims=True)


def _log_softmax(x):
    m = jnp.max(x, axis=-1, keepdims=True)
    y = x - m
    return y - jnp.log(jnp.sum(jnp.exp(y), axis=-1, keepdims=True))


def _reference_total(student_lava, teacher_lava, student_cls, teacher_cls,
                     student_sem, labels, split_map, epoch, module):
    temp = float(module.teacher_temp_schedule[epoch])
    offsets = np.cumsum(split_map)[:-1]

    def calc(s, t, center):
        crops = jnp.split(s / module.student_temp, offsets)[:-1]
        qs = jnp.split(_softmax((t - center) / temp), 2)
        loss, n = 0.0, 0
        for iq, q in enumerate(qs):
            for v, sv in enumerate(crops):
                if v == iq:
                    continue
                loss += jnp.mean(jnp.sum(-q * _log_softmax(sv), axis=-1))
                n += 1
        return loss / n

    lava = calc(student_lava, teacher_lava,
                jnp.zeros((1, teacher_lava.shape[-1])))
    plo = calc(student_cls, teacher_cls, jnp.zeros((1, teacher_cls.shape[-1])))

    cls_last = jnp.split(student_cls, offsets)[-1] / module.student_temp
    logp = _log_softmax(cls_last)
    sup = -jnp.mean(logp[jnp.arange(cls_last.shape[0]), labels])

    sem_pred = jnp.split(student_sem, offsets)[-1]
    targ = module.emb_matrix[labels]
    cos = (jnp.sum(sem_pred * targ, -1)
           / (jnp.maximum(jnp.linalg.norm(sem_pred, axis=-1), 1e-8)
              * jnp.maximum(jnp.linalg.norm(targ, axis=-1), 1e-8)))
    sem = jnp.mean(jnp.maximum(0.4 - cos, 0.0))
    return lava + plo + sup + sem


# --------------------------------------------------------------------------
if __name__ == "__main__":
    B = 8            # per-crop (and per-teacher-chunk) batch size
    B_lab = 8        # labeled batch size (last split)
    split_map = [B, B, B, B_lab]
    out_dim = 64
    num_classes = 16
    emb_dim = 32
    epoch = 2

    key = jax.random.PRNGKey(0)
    ks = jax.random.split(key, 8)
    total_n = sum(split_map)
    student_lava = jax.random.normal(ks[0], (total_n, out_dim), jnp.float32)
    teacher_lava = jax.random.normal(ks[1], (2 * B, out_dim), jnp.float32)
    student_cls = jax.random.normal(ks[2], (total_n, num_classes), jnp.float32)
    teacher_cls = jax.random.normal(ks[3], (2 * B, num_classes), jnp.float32)
    student_sem = jax.random.normal(ks[4], (total_n, emb_dim), jnp.float32)
    teacher_sem = jax.random.normal(ks[5], (2 * B, emb_dim), jnp.float32)  # unused in fwd
    labels = jax.random.randint(ks[6], (B_lab,), 0, num_classes)
    emb_matrix = jax.random.normal(ks[7], (num_classes, emb_dim), jnp.float32)

    loss_mod = LAVALossPallas(
        out_dim=out_dim, ncrops=len(split_map) - 1,
        warmup_teacher_temp=0.04, teacher_temp=0.07,
        warmup_teacher_temp_epochs=4, nepochs=10,
        num_classes=num_classes, emb_matrix=emb_matrix)

    total_loss, stats = loss_mod(student_lava, teacher_lava,
                                 student_cls, teacher_cls,
                                 student_sem, teacher_sem,
                                 labels, split_map, epoch)
    total_loss = jax.block_until_ready(total_loss)

    ref = _reference_total(student_lava, teacher_lava, student_cls, teacher_cls,
                           student_sem, labels, split_map, epoch, loss_mod)
    np.testing.assert_allclose(np.asarray(total_loss), np.asarray(ref),
                               rtol=1e-3, atol=1e-3)

    # the in-kernel EMA center updates must match the module semantics
    exp_center = jnp.mean(teacher_lava, axis=0, keepdims=True) * (1 - 0.9)
    np.testing.assert_allclose(np.asarray(loss_mod.center),
                               np.asarray(exp_center), rtol=1e-4, atol=1e-5)
    exp_center_cls = jnp.mean(teacher_cls, axis=0, keepdims=True) * (1 - 0.9)
    np.testing.assert_allclose(np.asarray(loss_mod.center_class),
                               np.asarray(exp_center_cls), rtol=1e-4, atol=1e-5)

    print("KERNEL_OK")
</pallas_src>

<mosaic_0001>
module attributes {stable_mosaic.version = 11 : i64} {
  func.func @_lava_fused_kernel(%arg0: memref<8xf32, #tpu.memory_space<smem>>, %arg1: memref<88x128xf32, #tpu.memory_space<vmem>>, %arg2: memref<26x128xf32, #tpu.memory_space<vmem>>, %arg3: memref<3x128xf32, #tpu.memory_space<vmem>>) attributes {dimension_semantics = [], scalar_prefetch = 0 : i64, scratch_operands = 0 : i64, tpu.core_type = #tpu.core_type<tc>} {
    %c0 = arith.constant 0 : index
    %0 = memref.load %arg0[%c0] : memref<8xf32, #tpu.memory_space<smem>>
    %c1 = arith.constant 1 : index
    %1 = memref.load %arg0[%c1] : memref<8xf32, #tpu.memory_space<smem>>
    %c2 = arith.constant 2 : index
    %2 = memref.load %arg0[%c2] : memref<8xf32, #tpu.memory_space<smem>>
    %c3 = arith.constant 3 : index
    %3 = memref.load %arg0[%c3] : memref<8xf32, #tpu.memory_space<smem>>
    %c4 = arith.constant 4 : index
    %4 = memref.load %arg0[%c4] : memref<8xf32, #tpu.memory_space<smem>>
    %c5 = arith.constant 5 : index
    %5 = memref.load %arg0[%c5] : memref<8xf32, #tpu.memory_space<smem>>
    %c6 = arith.constant 6 : index
    %6 = memref.load %arg0[%c6] : memref<8xf32, #tpu.memory_space<smem>>
    %c7 = arith.constant 7 : index
    %7 = memref.load %arg0[%c7] : memref<8xf32, #tpu.memory_space<smem>>
    %8 = tpu.iota {dimensions = array<i32: 0>} : vector<16x1xi32>
    %c8_i32 = arith.constant 8 : i32
    %9 = vector.broadcast %c8_i32 : i32 to vector<16x1xi32>
    %10 = arith.cmpi slt, %8, %9 : vector<16x1xi32>
    %11 = tpu.iota {dimensions = array<i32: 1>} : vector<1x128xi32>
    %c24 = arith.constant 24 : index
    %c0_0 = arith.constant 0 : index
    %12 = vector.load %arg2[%c24, %c0_0] : memref<26x128xf32, #tpu.memory_space<vmem>>, vector<1x128xf32>
    %c25 = arith.constant 25 : index
    %c0_1 = arith.constant 0 : index
    %13 = vector.load %arg2[%c25, %c0_1] : memref<26x128xf32, #tpu.memory_space<vmem>>, vector<1x128xf32>
    %14 = vector.shape_cast %12 : vector<1x128xf32> to vector<1x128xf32>
    %15 = vector.broadcast %14 : vector<1x128xf32> to vector<16x128xf32>
    %16 = vector.shape_cast %13 : vector<1x128xf32> to vector<1x128xf32>
    %17 = vector.broadcast %16 : vector<1x128xf32> to vector<16x128xf32>
    %18 = vector.shape_cast %10 : vector<16x1xi1> to vector<16x1xi1>
    %19 = vector.broadcast %18 : vector<16x1xi1> to vector<16x128xi1>
    %20 = arith.select %19, %15, %17 : vector<16x128xi1>, vector<16x128xf32>
    %cst = arith.constant 0.000000e+00 : f32
    %21 = vector.broadcast %cst : f32 to vector<1x128xf32>
    %cst_2 = arith.constant 0.000000e+00 : f32
    %22 = vector.broadcast %cst_2 : f32 to vector<1x128xf32>
    %c0_3 = arith.constant 0 : index
    %c0_4 = arith.constant 0 : index
    %23 = vector.load %arg1[%c0_3, %c0_4] : memref<88x128xf32, #tpu.memory_space<vmem>>, vector<16x128xf32>
    %24 = arith.subf %23, %20 : vector<16x128xf32>
    %25 = vector.broadcast %0 : f32 to vector<16x128xf32>
    %26 = arith.mulf %24, %25 : vector<16x128xf32>
    %cst_5 = arith.constant dense<0xFF800000> : vector<16xf32>
    %27 = vector.multi_reduction <maximumf>, %26, %cst_5 [1] : vector<16x128xf32> to vector<16xf32>
    %28 = vector.shape_cast %27 : vector<16xf32> to vector<16x1xf32>
    %29 = vector.broadcast %28 : vector<16x1xf32> to vector<16x128xf32>
    %30 = arith.subf %26, %29 : vector<16x128xf32>
    %31 = math.exp %30 : vector<16x128xf32>
    %cst_6 = arith.constant dense<0.000000e+00> : vector<16xf32>
    %32 = vector.multi_reduction <add>, %31, %cst_6 [1] : vector<16x128xf32> to vector<16xf32>
    %33 = vector.shape_cast %32 : vector<16xf32> to vector<16x1xf32>
    %34 = vector.broadcast %33 : vector<16x1xf32> to vector<16x128xf32>
    %35 = arith.divf %31, %34 : vector<16x128xf32>
    %cst_7 = arith.constant 0.000000e+00 : f32
    %36 = vector.shape_cast %10 : vector<16x1xi1> to vector<16x1xi1>
    %37 = vector.broadcast %36 : vector<16x1xi1> to vector<16x128xi1>
    %38 = vector.broadcast %cst_7 : f32 to vector<16x128xf32>
    %39 = arith.select %37, %23, %38 : vector<16x128xi1>, vector<16x128xf32>
    %cst_8 = arith.constant dense<0.000000e+00> : vector<128xf32>
    %40 = vector.multi_reduction <add>, %39, %cst_8 [0] : vector<16x128xf32> to vector<128xf32>
    %41 = vector.shape_cast %40 : vector<128xf32> to vector<1x128xf32>
    %42 = arith.addf %21, %41 : vector<1x128xf32>
    %43 = arith.subf %23, %39 : vector<16x128xf32>
    %cst_9 = arith.constant dense<0.000000e+00> : vector<128xf32>
    %44 = vector.multi_reduction <add>, %43, %cst_9 [0] : vector<16x128xf32> to vector<128xf32>
    %45 = vector.shape_cast %44 : vector<128xf32> to vector<1x128xf32>
    %46 = arith.addf %22, %45 : vector<1x128xf32>
    %c16 = arith.constant 16 : index
    %c0_10 = arith.constant 0 : index
    %47 = vector.load %arg1[%c16, %c0_10] : memref<88x128xf32, #tpu.memory_space<vmem>>, vector<16x128xf32>
    %48 = arith.subf %47, %20 : vector<16x128xf32>
    %49 = vector.broadcast %0 : f32 to vector<16x128xf32>
    %50 = arith.mulf %48, %49 : vector<16x128xf32>
    %cst_11 = arith.constant dense<0xFF800000> : vector<16xf32>
    %51 = vector.multi_reduction <maximumf>, %50, %cst_11 [1] : vector<16x128xf32> to vector<16xf32>
    %52 = vector.shape_cast %51 : vector<16xf32> to vector<16x1xf32>
    %53 = vector.broadcast %52 : vector<16x1xf32> to vector<16x128xf32>
    %54 = arith.subf %50, %53 : vector<16x128xf32>
    %55 = math.exp %54 : vector<16x128xf32>
    %cst_12 = arith.constant dense<0.000000e+00> : vector<16xf32>
    %56 = vector.multi_reduction <add>, %55, %cst_12 [1] : vector<16x128xf32> to vector<16xf32>
    %57 = vector.shape_cast %56 : vector<16xf32> to vector<16x1xf32>
    %58 = vector.broadcast %57 : vector<16x1xf32> to vector<16x128xf32>
    %59 = arith.divf %55, %58 : vector<16x128xf32>
    %cst_13 = arith.constant 0.000000e+00 : f32
    %60 = vector.shape_cast %10 : vector<16x1xi1> to vector<16x1xi1>
    %61 = vector.broadcast %60 : vector<16x1xi1> to vector<16x128xi1>
    %62 = vector.broadcast %cst_13 : f32 to vector<16x128xf32>
    %63 = arith.select %61, %47, %62 : vector<16x128xi1>, vector<16x128xf32>
    %cst_14 = arith.constant dense<0.000000e+00> : vector<128xf32>
    %64 = vector.multi_reduction <add>, %63, %cst_14 [0] : vector<16x128xf32> to vector<128xf32>
    %65 = vector.shape_cast %64 : vector<128xf32> to vector<1x128xf32>
    %66 = arith.addf %42, %65 : vector<1x128xf32>
    %67 = arith.subf %47, %63 : vector<16x128xf32>
    %cst_15 = arith.constant dense<0.000000e+00> : vector<128xf32>
    %68 = vector.multi_reduction <add>, %67, %cst_15 [0] : vector<16x128xf32> to vector<128xf32>
    %69 = vector.shape_cast %68 : vector<128xf32> to vector<1x128xf32>
    %70 = arith.addf %46, %69 : vector<1x128xf32>
    %71 = vector.broadcast %1 : f32 to vector<16x128xf32>
    %cst_16 = arith.constant 0.000000e+00 : f32
    %72 = vector.broadcast %cst_16 : f32 to vector<16x1xf32>
    %c32 = arith.constant 32 : index
    %c0_17 = arith.constant 0 : index
    %73 = vector.load %arg1[%c32, %c0_17] : memref<88x128xf32, #tpu.memory_space<vmem>>, vector<16x128xf32>
    %74 = arith.mulf %73, %71 : vector<16x128xf32>
    %cst_18 = arith.constant dense<0xFF800000> : vector<16xf32>
    %75 = vector.multi_reduction <maximumf>, %74, %cst_18 [1] : vector<16x128xf32> to vector<16xf32>
    %76 = vector.shape_cast %75 : vector<16xf32> to vector<16x1xf32>
    %77 = vector.broadcast %76 : vector<16x1xf32> to vector<16x128xf32>
    %78 = arith.subf %74, %77 : vector<16x128xf32>
    %79 = math.exp %78 : vector<16x128xf32>
    %cst_19 = arith.constant dense<0.000000e+00> : vector<16xf32>
    %80 = vector.multi_reduction <add>, %79, %cst_19 [1] : vector<16x128xf32> to vector<16xf32>
    %81 = vector.shape_cast %80 : vector<16xf32> to vector<16x1xf32>
    %82 = math.log %81 : vector<16x1xf32>
    %83 = arith.addf %76, %82 : vector<16x1xf32>
    %84 = arith.mulf %59, %74 : vector<16x128xf32>
    %cst_20 = arith.constant dense<0.000000e+00> : vector<16xf32>
    %85 = vector.multi_reduction <add>, %84, %cst_20 [1] : vector<16x128xf32> to vector<16xf32>
    %86 = vector.shape_cast %85 : vector<16xf32> to vector<16x1xf32>
    %87 = arith.subf %83, %86 : vector<16x1xf32>
    %88 = arith.addf %72, %87 : vector<16x1xf32>
    %c48 = arith.constant 48 : index
    %c0_21 = arith.constant 0 : index
    %89 = vector.load %arg1[%c48, %c0_21] : memref<88x128xf32, #tpu.memory_space<vmem>>, vector<16x128xf32>
    %90 = arith.mulf %89, %71 : vector<16x128xf32>
    %cst_22 = arith.constant dense<0xFF800000> : vector<16xf32>
    %91 = vector.multi_reduction <maximumf>, %90, %cst_22 [1] : vector<16x128xf32> to vector<16xf32>
    %92 = vector.shape_cast %91 : vector<16xf32> to vector<16x1xf32>
    %93 = vector.broadcast %92 : vector<16x1xf32> to vector<16x128xf32>
    %94 = arith.subf %90, %93 : vector<16x128xf32>
    %95 = math.exp %94 : vector<16x128xf32>
    %cst_23 = arith.constant dense<0.000000e+00> : vector<16xf32>
    %96 = vector.multi_reduction <add>, %95, %cst_23 [1] : vector<16x128xf32> to vector<16xf32>
    %97 = vector.shape_cast %96 : vector<16xf32> to vector<16x1xf32>
    %98 = math.log %97 : vector<16x1xf32>
    %99 = arith.addf %92, %98 : vector<16x1xf32>
    %100 = arith.mulf %35, %90 : vector<16x128xf32>
    %cst_24 = arith.constant dense<0.000000e+00> : vector<16xf32>
    %101 = vector.multi_reduction <add>, %100, %cst_24 [1] : vector<16x128xf32> to vector<16xf32>
    %102 = vector.shape_cast %101 : vector<16xf32> to vector<16x1xf32>
    %103 = arith.subf %99, %102 : vector<16x1xf32>
    %104 = arith.addf %88, %103 : vector<16x1xf32>
    %c64 = arith.constant 64 : index
    %c0_25 = arith.constant 0 : index
    %105 = vector.load %arg1[%c64, %c0_25] : memref<88x128xf32, #tpu.memory_space<vmem>>, vector<16x128xf32>
    %106 = arith.mulf %105, %71 : vector<16x128xf32>
    %cst_26 = arith.constant dense<0xFF800000> : vector<16xf32>
    %107 = vector.multi_reduction <maximumf>, %106, %cst_26 [1] : vector<16x128xf32> to vector<16xf32>
    %108 = vector.shape_cast %107 : vector<16xf32> to vector<16x1xf32>
    %109 = vector.broadcast %108 : vector<16x1xf32> to vector<16x128xf32>
    %110 = arith.subf %106, %109 : vector<16x128xf32>
    %111 = math.exp %110 : vector<16x128xf32>
    %cst_27 = arith.constant dense<0.000000e+00> : vector<16xf32>
    %112 = vector.multi_reduction <add>, %111, %cst_27 [1] : vector<16x128xf32> to vector<16xf32>
    %113 = vector.shape_cast %112 : vector<16xf32> to vector<16x1xf32>
    %114 = math.log %113 : vector<16x1xf32>
    %115 = arith.addf %108, %114 : vector<16x1xf32>
    %116 = arith.mulf %35, %106 : vector<16x128xf32>
    %cst_28 = arith.constant dense<0.000000e+00> : vector<16xf32>
    %117 = vector.multi_reduction <add>, %116, %cst_28 [1] : vector<16x128xf32> to vector<16xf32>
    %118 = vector.shape_cast %117 : vector<16xf32> to vector<16x1xf32>
    %119 = arith.subf %115, %118 : vector<16x1xf32>
    %120 = arith.addf %104, %119 : vector<16x1xf32>
    %121 = arith.mulf %59, %106 : vector<16x128xf32>
    %cst_29 = arith.constant dense<0.000000e+00> : vector<16xf32>
    %122 = vector.multi_reduction <add>, %121, %cst_29 [1] : vector<16x128xf32> to vector<16xf32>
    %123 = vector.shape_cast %122 : vector<16xf32> to vector<16x1xf32>
    %124 = arith.subf %115, %123 : vector<16x1xf32>
    %125 = arith.addf %120, %124 : vector<16x1xf32>
    %cst_30 = arith.constant 0.000000e+00 : f32
    %126 = vector.broadcast %cst_30 : f32 to vector<16x1xf32>
    %127 = arith.select %10, %125, %126 : vector<16x1xi1>, vector<16x1xf32>
    %128 = vector.shape_cast %127 : vector<16x1xf32> to vector<1x16x1xf32>
    %cst_31 = arith.constant dense<0.000000e+00> : vector<1xf32>
    %129 = vector.multi_reduction <add>, %128, %cst_31 [1, 2] : vector<1x16x1xf32> to vector<1xf32>
    %130 = vector.shape_cast %129 : vector<1xf32> to vector<1x1x1xf32>
    %131 = vector.extract %130[0, 0, 0] : f32 from vector<1x1x1xf32>
    %132 = vector.broadcast %131 : f32 to vector<1x1xf32>
    %133 = vector.shape_cast %125 : vector<16x1xf32> to vector<1x16x1xf32>
    %cst_32 = arith.constant dense<0.000000e+00> : vector<1xf32>
    %134 = vector.multi_reduction <add>, %133, %cst_32 [1, 2] : vector<1x16x1xf32> to vector<1xf32>
    %135 = vector.shape_cast %134 : vector<1xf32> to vector<1x1x1xf32>
    %136 = vector.extract %135[0, 0, 0] : f32 from vector<1x1x1xf32>
    %137 = vector.broadcast %136 : f32 to vector<1x1xf32>
    %138 = vector.broadcast %2 : f32 to vector<1x1xf32>
    %139 = arith.mulf %132, %138 : vector<1x1xf32>
    %140 = arith.subf %137, %132 : vector<1x1xf32>
    %141 = vector.broadcast %3 : f32 to vector<1x1xf32>
    %142 = arith.mulf %140, %141 : vector<1x1xf32>
    %c80 = arith.constant 80 : index
    %c0_33 = arith.constant 0 : index
    %143 = vector.load %arg1[%c80, %c0_33] : memref<88x128xf32, #tpu.memory_space<vmem>>, vector<8x128xf32>
    %144 = vector.broadcast %1 : f32 to vector<8x128xf32>
    %145 = arith.mulf %143, %144 : vector<8x128xf32>
    %cst_34 = arith.constant dense<0xFF800000> : vector<8xf32>
    %146 = vector.multi_reduction <maximumf>, %145, %cst_34 [1] : vector<8x128xf32> to vector<8xf32>
    %147 = vector.shape_cast %146 : vector<8xf32> to vector<8x1xf32>
    %148 = vector.broadcast %147 : vector<8x1xf32> to vector<8x128xf32>
    %149 = arith.subf %145, %148 : vector<8x128xf32>
    %150 = math.exp %149 : vector<8x128xf32>
    %cst_35 = arith.constant dense<0.000000e+00> : vector<8xf32>
    %151 = vector.multi_reduction <add>, %150, %cst_35 [1] : vector<8x128xf32> to vector<8xf32>
    %152 = vector.shape_cast %151 : vector<8xf32> to vector<8x1xf32>
    %153 = math.log %152 : vector<8x1xf32>
    %154 = arith.addf %147, %153 : vector<8x1xf32>
    %c0_36 = arith.constant 0 : index
    %c0_37 = arith.constant 0 : index
    %155 = vector.load %arg2[%c0_36, %c0_37] : memref<26x128xf32, #tpu.memory_space<vmem>>, vector<8x128xf32>
    %156 = arith.mulf %155, %145 : vector<8x128xf32>
    %cst_38 = arith.constant dense<0.000000e+00> : vector<8xf32>
    %157 = vector.multi_reduction <add>, %156, %cst_38 [1] : vector<8x128xf32> to vector<8xf32>
    %158 = vector.shape_cast %157 : vector<8xf32> to vector<8x1xf32>
    %159 = arith.subf %154, %158 : vector<8x1xf32>
    %160 = vector.shape_cast %159 : vector<8x1xf32> to vector<1x8x1xf32>
    %cst_39 = arith.constant dense<0.000000e+00> : vector<1xf32>
    %161 = vector.multi_reduction <add>, %160, %cst_39 [1, 2] : vector<1x8x1xf32> to vector<1xf32>
    %162 = vector.shape_cast %161 : vector<1xf32> to vector<1x1x1xf32>
    %163 = vector.extract %162[0, 0, 0] : f32 from vector<1x1x1xf32>
    %164 = vector.broadcast %163 : f32 to vector<1x1xf32>
    %165 = vector.broadcast %4 : f32 to vector<1x1xf32>
    %166 = arith.mulf %164, %165 : vector<1x1xf32>
    %c8 = arith.constant 8 : index
    %c0_40 = arith.constant 0 : index
    %167 = vector.load %arg2[%c8, %c0_40] : memref<26x128xf32, #tpu.memory_space<vmem>>, vector<8x128xf32>
    %c16_41 = arith.constant 16 : index
    %c0_42 = arith.constant 0 : index
    %168 = vector.load %arg2[%c16_41, %c0_42] : memref<26x128xf32, #tpu.memory_space<vmem>>, vector<8x128xf32>
    %169 = arith.mulf %167, %168 : vector<8x128xf32>
    %cst_43 = arith.constant dense<0.000000e+00> : vector<8xf32>
    %170 = vector.multi_reduction <add>, %169, %cst_43 [1] : vector<8x128xf32> to vector<8xf32>
    %171 = vector.shape_cast %170 : vector<8xf32> to vector<8x1xf32>
    %172 = arith.mulf %167, %167 : vector<8x128xf32>
    %cst_44 = arith.constant dense<0.000000e+00> : vector<8xf32>
    %173 = vector.multi_reduction <add>, %172, %cst_44 [1] : vector<8x128xf32> to vector<8xf32>
    %174 = vector.shape_cast %173 : vector<8xf32> to vector<8x1xf32>
    %175 = math.sqrt %174 : vector<8x1xf32>
    %cst_45 = arith.constant 9.99999993E-9 : f32
    %176 = vector.broadcast %cst_45 : f32 to vector<8x1xf32>
    %177 = arith.maximumf %175, %176 : vector<8x1xf32>
    %178 = arith.mulf %168, %168 : vector<8x128xf32>
    %cst_46 = arith.constant dense<0.000000e+00> : vector<8xf32>
    %179 = vector.multi_reduction <add>, %178, %cst_46 [1] : vector<8x128xf32> to vector<8xf32>
    %180 = vector.shape_cast %179 : vector<8xf32> to vector<8x1xf32>
    %181 = math.sqrt %180 : vector<8x1xf32>
    %cst_47 = arith.constant 9.99999993E-9 : f32
    %182 = vector.broadcast %cst_47 : f32 to vector<8x1xf32>
    %183 = arith.maximumf %181, %182 : vector<8x1xf32>
    %184 = arith.mulf %177, %183 : vector<8x1xf32>
    %185 = tpu.reciprocal %184 {approx = true} : vector<8x1xf32> -> vector<8x1xf32>
    %186 = arith.mulf %171, %185 : vector<8x1xf32>
    %cst_48 = arith.constant 4.000000e-01 : f32
    %187 = vector.broadcast %cst_48 : f32 to vector<8x1xf32>
    %188 = arith.subf %187, %186 : vector<8x1xf32>
    %cst_49 = arith.constant 0.000000e+00 : f32
    %189 = vector.broadcast %cst_49 : f32 to vector<8x1xf32>
    %190 = arith.maximumf %188, %189 : vector<8x1xf32>
    %191 = vector.shape_cast %190 : vector<8x1xf32> to vector<1x8x1xf32>
    %cst_50 = arith.constant dense<0.000000e+00> : vector<1xf32>
    %192 = vector.multi_reduction <add>, %191, %cst_50 [1, 2] : vector<1x8x1xf32> to vector<1xf32>
    %193 = vector.shape_cast %192 : vector<1xf32> to vector<1x1x1xf32>
    %194 = vector.extract %193[0, 0, 0] : f32 from vector<1x1x1xf32>
    %195 = vector.broadcast %194 : f32 to vector<1x1xf32>
    %196 = vector.broadcast %5 : f32 to vector<1x1xf32>
    %197 = arith.mulf %195, %196 : vector<1x1xf32>
    %198 = arith.addf %139, %142 : vector<1x1xf32>
    %199 = arith.addf %198, %166 : vector<1x1xf32>
    %200 = arith.addf %199, %197 : vector<1x1xf32>
    %201 = vector.broadcast %6 : f32 to vector<1x128xf32>
    %202 = arith.mulf %12, %201 : vector<1x128xf32>
    %c64_i32 = arith.constant 64 : i32
    %203 = vector.broadcast %c64_i32 : i32 to vector<1x128xi32>
    %204 = arith.cmpi slt, %11, %203 : vector<1x128xi32>
    %205 = vector.broadcast %7 : f32 to vector<1x128xf32>
    %206 = arith.mulf %66, %205 : vector<1x128xf32>
    %cst_51 = arith.constant 0.000000e+00 : f32
    %207 = vector.broadcast %cst_51 : f32 to vector<1x128xf32>
    %208 = arith.select %204, %206, %207 : vector<1x128xi1>, vector<1x128xf32>
    %209 = arith.addf %202, %208 : vector<1x128xf32>
    %210 = vector.broadcast %6 : f32 to vector<1x128xf32>
    %211 = arith.mulf %13, %210 : vector<1x128xf32>
    %c16_i32 = arith.constant 16 : i32
    %212 = vector.broadcast %c16_i32 : i32 to vector<1x128xi32>
    %213 = arith.cmpi slt, %11, %212 : vector<1x128xi32>
    %214 = vector.broadcast %7 : f32 to vector<1x128xf32>
    %215 = arith.mulf %70, %214 : vector<1x128xf32>
    %cst_52 = arith.constant 0.000000e+00 : f32
    %216 = vector.broadcast %cst_52 : f32 to vector<1x128xf32>
    %217 = arith.select %213, %215, %216 : vector<1x128xi1>, vector<1x128xf32>
    %218 = arith.addf %211, %217 : vector<1x128xf32>
    %c0_i32 = arith.constant 0 : i32
    %219 = vector.broadcast %c0_i32 : i32 to vector<1x128xi32>
    %220 = arith.cmpi eq, %11, %219 : vector<1x128xi32>
    %cst_53 = arith.constant 0.000000e+00 : f32
    %221 = vector.shape_cast %139 : vector<1x1xf32> to vector<1x1xf32>
    %222 = vector.broadcast %221 : vector<1x1xf32> to vector<1x128xf32>
    %223 = vector.broadcast %cst_53 : f32 to vector<1x128xf32>
    %224 = arith.select %220, %222, %223 : vector<1x128xi1>, vector<1x128xf32>
    %c1_i32 = arith.constant 1 : i32
    %225 = vector.broadcast %c1_i32 : i32 to vector<1x128xi32>
    %226 = arith.cmpi eq, %11, %225 : vector<1x128xi32>
    %cst_54 = arith.constant 0.000000e+00 : f32
    %227 = vector.shape_cast %142 : vector<1x1xf32> to vector<1x1xf32>
    %228 = vector.broadcast %227 : vector<1x1xf32> to vector<1x128xf32>
    %229 = vector.broadcast %cst_54 : f32 to vector<1x128xf32>
    %230 = arith.select %226, %228, %229 : vector<1x128xi1>, vector<1x128xf32>
    %231 = arith.addf %224, %230 : vector<1x128xf32>
    %c2_i32 = arith.constant 2 : i32
    %232 = vector.broadcast %c2_i32 : i32 to vector<1x128xi32>
    %233 = arith.cmpi eq, %11, %232 : vector<1x128xi32>
    %cst_55 = arith.constant 0.000000e+00 : f32
    %234 = vector.shape_cast %166 : vector<1x1xf32> to vector<1x1xf32>
    %235 = vector.broadcast %234 : vector<1x1xf32> to vector<1x128xf32>
    %236 = vector.broadcast %cst_55 : f32 to vector<1x128xf32>
    %237 = arith.select %233, %235, %236 : vector<1x128xi1>, vector<1x128xf32>
    %238 = arith.addf %231, %237 : vector<1x128xf32>
    %c3_i32 = arith.constant 3 : i32
    %239 = vector.broadcast %c3_i32 : i32 to vector<1x128xi32>
    %240 = arith.cmpi eq, %11, %239 : vector<1x128xi32>
    %cst_56 = arith.constant 0.000000e+00 : f32
    %241 = vector.shape_cast %197 : vector<1x1xf32> to vector<1x1xf32>
    %242 = vector.broadcast %241 : vector<1x1xf32> to vector<1x128xf32>
    %243 = vector.broadcast %cst_56 : f32 to vector<1x128xf32>
    %244 = arith.select %240, %242, %243 : vector<1x128xi1>, vector<1x128xf32>
    %245 = arith.addf %238, %244 : vector<1x128xf32>
    %c4_i32 = arith.constant 4 : i32
    %246 = vector.broadcast %c4_i32 : i32 to vector<1x128xi32>
    %247 = arith.cmpi eq, %11, %246 : vector<1x128xi32>
    %cst_57 = arith.constant 0.000000e+00 : f32
    %248 = vector.shape_cast %200 : vector<1x1xf32> to vector<1x1xf32>
    %249 = vector.broadcast %248 : vector<1x1xf32> to vector<1x128xf32>
    %250 = vector.broadcast %cst_57 : f32 to vector<1x128xf32>
    %251 = arith.select %247, %249, %250 : vector<1x128xi1>, vector<1x128xf32>
    %252 = arith.addf %245, %251 : vector<1x128xf32>
    %253 = tpu.concatenate %252, %209, %218 in 0 : vector<1x128xf32>, vector<1x128xf32>, vector<1x128xf32> -> vector<3x128xf32>
    %c0_58 = arith.constant 0 : index
    %c0_59 = arith.constant 0 : index
    %254 = vector.load %arg3[%c0_58, %c0_59] : memref<3x128xf32, #tpu.memory_space<vmem>>, vector<3x128xf32>
    tpu.vector_store %arg3[%c0_58, %c0_59], %253 {strides = array<i32>} : memref<3x128xf32, #tpu.memory_space<vmem>>, vector<3x128xf32>,
    return
  }
}

</mosaic_0001>

<bundles_post_ra>
// kernel: tpu_custom_call.1
= control target key start
LH: loop header
LB: loop body
LE: loop exit
PB: predicated region body
PF: predicated region fallthrough
CT: control target
= control target key end

     0   :  { %8 = vsyncpa [#allocation5], 0  ;;  %s754_s0 = inlined_call_operand.hbm [shape: f32[8], index: 0, kind: input, shape index: {}]   ;;  %s755_s1 = inlined_call_operand.hbm [shape: f32[88,128], index: 1, kind: input, shape index: {}]   ;;  %s756_s2 = inlined_call_operand.hbm [shape: f32[26,128], index: 2, kind: input, shape index: {}]   ;;  %s757_s3 = inlined_call_operand.hbm [shape: f32[3,128], index: 3, kind: output, shape index: {}]  }
   0x1   :  { %9 = vsyncpa [#allocation3], 0 }
   0x2   :  { %10 = vsyncpa [#allocation8], 0 }
   0x3   :  { %11 = vsyncpa [#allocation4], 0  ;;  %s600_s12 = smov [#allocation2]   ;;  %s601_s15 = smov [#allocation6]  }
   0x4   :  { %19 = dma.hbm_to_smem %s754_s0, 16, %s600_s12, [#allocation5]  }
   0x5   :  { %s25_s16 = sshll.u32 %s601_s15, 4  ;;  %s26_s16 = int_to_ptr.vmem [resolvable:$true] %s25_s16 }
   0x6   :  { %s540_s17 = scalar_lea.vmem %s26_s16, 1408  ;;  %p545_p1 = scmp.lt.s32.totalorder %s26_s16, %s26_s16 }
   0x7   :  { %p541_p0 = scmp.ne.s32.totalorder %s26_s16, %s540_s17  ;;  %p546_p2 = scmp.lt.s32.totalorder %s540_s17, %s540_s17 }
   0x9   :  { %p547_p3 = por %p546_p2, %p545_p1 }
   0xb   :  { %p548_p4 = pnand %p547_p3, %p541_p0 }
   0xd   :  { %551 = shalt.err (!%p548_p4)
}
   0xe   :  { %s602_s18 = smov 128   ;;  %s603_s19 = smov 8  }
   0xf   :  { %31 = dma.hbm_to_vmem [thread:$0]  %s755_s1, 1408, %s26_s16, [#allocation3], %s602_s18, %s602_s18, %s603_s19  }
  0x10   :  { %s604_s22 = smov [#allocation7]  }
  0x11   :  { %s37_s23 = sshll.u32 %s604_s22, 4  ;;  %s38_s23 = int_to_ptr.vmem [resolvable:$true] %s37_s23 }
  0x12   :  { %s560_s0 = scalar_lea.vmem %s38_s23, 512  ;;  %p565_p6 = scmp.lt.s32.totalorder %s38_s23, %s38_s23 }
  0x13   :  { %p561_p5 = scmp.ne.s32.totalorder %s38_s23, %s560_s0  ;;  %p566_p7 = scmp.lt.s32.totalorder %s560_s0, %s560_s0 }
  0x15   :  { %p567_p8 = por %p566_p7, %p565_p6 }
  0x17   :  { %p568_p9 = pnand %p567_p8, %p561_p5 }
  0x19   :  { %571 = shalt.err (!%p568_p9)
}
  0x1a   :  { %43 = dma.hbm_to_vmem [thread:$0]  %s756_s2, 512, %s38_s23, [#allocation8], %s602_s18, %s602_s18, %s603_s19  }
  0x1b   :  { %592 = dma.done.wait [#allocation5], 16  }
  0x1c   :  { %593 = vsyncadd [#allocation5], 4294967280 }
  0x1d   :  { %594 = dma.done.wait [#allocation3], 1408  }
  0x1e   :  { %595 = vsyncadd [#allocation3], 4294965888 }
  0x1f   :  { %596 = dma.done.wait [#allocation8], 512  }
  0x20   :  { %597 = vsyncadd [#allocation8], 4294966784 }
  0x21   :  { %53 = sfence }
  0x22   :  { %s54_s1 = sld [smem:[#allocation2]]  ;;  %v67_v0 = vlaneseq  ;;  %v635_v1 = vld [vmem:[#allocation6] sm:$0xff]  ;;  %v637_v2 = vld [vmem:[#allocation6 + $0x10] sm:$0xff]  ;;  %v86_v6 = vld [vmem:[#allocation6 + $0x8] sm:$0xff]  ;;  %vm289_vm4 = vcmask 7168   ;;  %vm431_vm12 = vcmask 1040384  }
  0x23   :  { %v120_v3 = vsub.f32 %v635_v1, %v635_v1  ;;  %v164_v4 = vsub.f32 %v637_v2, %v637_v2  ;;  %v131_v7 = vld [vmem:[#allocation6 + $0x18] sm:$0xff]  ;;  %v644_v8 = vld [vmem:[#allocation7 + $0x18] sm:$0x1]  ;;  %v646_v9 = vld [vmem:[#allocation7 + $0x19] sm:$0x1]  ;;  %s453_s2 = sld [smem:[#allocation2 + $0x1]] }
  0x24   :  { %v72_v5 = vshrl.u32 %v67_v0, 7  ;;  %v175_v25 = vld [vmem:[#allocation6 + $0x20] sm:$0xff]  ;;  %v176_v26 = vld [vmem:[#allocation6 + $0x28] sm:$0xff]  ;;  %v209_v29 = vld [vmem:[#allocation6 + $0x30] sm:$0xff]  ;;  %s458_s26 = sld [smem:[#allocation2 + $0x6]]  ;;  %s605_s9 = smov [#allocation9]  }
  0x25   :  { %v648_v10 = vadd.f32 %v120_v3, %v86_v6  ;;  %v650_v11 = vadd.f32 %v164_v4, %v131_v7  ;;  %v210_v30 = vld [vmem:[#allocation6 + $0x38] sm:$0xff]  ;;  %v243_v33 = vld [vmem:[#allocation6 + $0x40] sm:$0xff]  ;;  %v244_v34 = vld [vmem:[#allocation6 + $0x48] sm:$0xff]  ;;  %s459_s27 = sld [smem:[#allocation2 + $0x7]]  ;;  %s442_s10 = sshll.u32 %s605_s9, 4  ;;  %vm433_vm13 = vcmask 1041408   ;;  %s443_s10 = int_to_ptr.vmem [resolvable:$true] %s442_s10 }
  0x26   :  { %v73_v12 = vsub.s32 0, %v72_v5  ;;  %v321_v37 = vld [vmem:[#allocation6 + $0x50] sm:$0xff]  ;;  %s454_s28 = sld [smem:[#allocation2 + $0x2]]  ;;  %s572_s11 = scalar_lea.vmem %s443_s10, 64 }
  0x27   :  { %s456_s29 = sld [smem:[#allocation2 + $0x4]]  ;;  %p573_p10 = scmp.ne.s32.totalorder %s443_s10, %s572_s11 }
  0x28   :  { %v74_v13 = vrot.slane %v644_v8, %v73_v12  ;;  %v78_v14 = vrot.slane %v646_v9, %v73_v12  ;;  %v89_v15 = vstv %s54_s1  ;;  %s455_s30 = sld [smem:[#allocation2 + $0x3]]  ;;  %p577_p11 = scmp.lt.s32.totalorder %s443_s10, %s443_s10 }
  0x29   :  { %v174_v24 = vstv %s453_s2  ;;  %s457_s4 = sld [smem:[#allocation2 + $0x5]]  ;;  %p578_p12 = scmp.lt.s32.totalorder %s572_s11, %s572_s11 }
  0x2a   :  { %v87_v16 = vsub.f32 %v635_v1, %v74_v13  ;;  %v132_v17 = vsub.f32 %v637_v2, %v74_v13  ;;  %v88_v18 = vsub.f32 %v86_v6, %v78_v14  ;;  %v133_v21 = vsub.f32 %v131_v7, %v78_v14  ;;  %v351_v14 = vld [vmem:[#allocation7 + $0x8] sm:$0xff] }
  0x2b   :  { %v656_v27 = vmul.f32 %v175_v25, %v174_v24  ;;  %v658_v28 = vmul.f32 %v176_v26, %v174_v24  ;;  %v662_v31 = vmul.f32 %v209_v29, %v174_v24  ;;  %v664_v32 = vmul.f32 %v210_v30, %v174_v24  ;;  %p579_p13 = por %p578_p12, %p577_p11 }
  0x2c   :  { %v90_v19 = vmul.f32 %v89_v15, %v87_v16  ;;  %v134_v20 = vmul.f32 %v132_v17, %v89_v15  ;;  %v91_v22 = vmul.f32 %v89_v15, %v88_v18  ;;  %v135_v23 = vmul.f32 %v133_v21, %v89_v15  ;;  %v352_v21 = vld [vmem:[#allocation7 + $0x10] sm:$0xff] }
  0x2d   :  { %v668_v35 = vmul.f32 %v243_v33, %v174_v24  ;;  %v670_v36 = vmul.f32 %v244_v34, %v174_v24  ;;  %v674_v38 = vmul.f32 %v321_v37, %v174_v24  ;;  %p580_p0 = pnand %p579_p13, %p573_p10 }
  0x2e   :  { %92 = vmax.xlane.f32.xlu0 %v90_v19  ;;  %136 = vmax.xlane.f32.xlu1 %v134_v20 }
  0x32   :  { %94 = vmax.xlane.f32.xlu0 %v91_v22  ;;  %138 = vmax.xlane.f32.xlu1 %v135_v23 }
  0x36   :  { %179 = vmax.xlane.f32.xlu0 %v656_v27  ;;  %181 = vmax.xlane.f32.xlu1 %v658_v28 }
  0x3a   :  { %213 = vmax.xlane.f32.xlu0 %v662_v31  ;;  %215 = vmax.xlane.f32.xlu1 %v664_v32 }
  0x3e   :  { %247 = vmax.xlane.f32.xlu0 %v668_v35  ;;  %249 = vmax.xlane.f32.xlu1 %v670_v36 }
  0x42   :  { %323 = vmax.xlane.f32.xlu0 %v674_v38 }
  0xb7   :  { %v93_v39 = vpop.xlane.xlu0 %92  ;;  %v137_v40 = vpop.xlane.xlu1 %136 }
  0xb8   :  { %v96_v41 = vsub.f32 %v90_v19, %v93_v39  ;;  %v140_v42 = vsub.f32 %v134_v20, %v137_v40  ;;  %v356_v19 = vmul.f32 %v351_v14, %v351_v14 }
  0xba   :  { %v98_v43 = vmul.f32 1.442695, %v96_v41  ;;  %v142_v44 = vmul.f32 1.442695, %v140_v42 }
  0xbb   :  { %v95_v45 = vpop.xlane.xlu0 %94  ;;  %v139_v46 = vpop.xlane.xlu1 %138 }
  0xbc   :  { %474 = vpow2.f32 %v98_v43  ;;  %v97_v47 = vsub.f32 %v91_v22, %v95_v45  ;;  %v141_v48 = vsub.f32 %v135_v23, %v139_v46  ;;  %v367_v22 = vmul.f32 %v352_v21, %v352_v21 }
  0xbd   :  { %476 = vpow2.f32 %v142_v44 }
  0xbe   :  { %v100_v49 = vmul.f32 1.442695, %v97_v47  ;;  %v144_v50 = vmul.f32 1.442695, %v141_v48 }
  0xbf   :  { %v677_v51 = vpop.xlane.xlu0 %179  ;;  %v679_v52 = vpop.xlane.xlu1 %181 }
  0xc0   :  { %478 = vpow2.f32 %v100_v49  ;;  %v183_v53 = vsub.f32 %v656_v27, %v677_v51  ;;  %v184_v54 = vsub.f32 %v658_v28, %v679_v52 }
  0xc1   :  { %480 = vpow2.f32 %v144_v50 }
  0xc2   :  { %v185_v55 = vmul.f32 1.442695, %v183_v53  ;;  %v187_v59 = vmul.f32 1.442695, %v184_v54 }
  0xc3   :  { %v685_v56 = vpop.xlane.xlu0 %213  ;;  %v687_v57 = vpop.xlane.xlu1 %215 }
  0xc4   :  { %v217_v58 = vsub.f32 %v662_v31, %v685_v56  ;;  %v218_v60 = vsub.f32 %v664_v32, %v687_v57  ;;  %482 = vpow2.f32 %v185_v55 }
  0xc5   :  { %484 = vpow2.f32 %v187_v59  ;;  %v353_v59 = vmul.f32 %v352_v21, %v351_v14 }
  0xc6   :  { %v219_v61 = vmul.f32 1.442695, %v217_v58  ;;  %v221_v5 = vmul.f32 1.442695, %v218_v60  ;;  %v333_v60 = vld [vmem:[#allocation7] sm:$0xff] }
  0xc7   :  { %v693_v62 = vpop.xlane.xlu0 %247  ;;  %v695_v63 = vpop.xlane.xlu1 %249 }
  0xc8   :  { %v251_v3 = vsub.f32 %v668_v35, %v693_v62  ;;  %v252_v6 = vsub.f32 %v670_v36, %v695_v63  ;;  %486 = vpow2.f32 %v219_v61 }
  0xc9   :  { %v475_v4 = vpop.eup %474  ;;  %488 = vpow2.f32 %v221_v5 }
  0xca   :  { %102 = vadd.xlane.f32.xlu1 %v475_v4  ;;  %v253_v7 = vmul.f32 1.442695, %v251_v3  ;;  %v477_v12 = vpop.eup %476  ;;  %v255_v17 = vmul.f32 1.442695, %v252_v6 }
  0xcb   :  { %v701_v13 = vpop.xlane.xlu0 %323 }
  0xcc   :  { %v325_v15 = vsub.f32 %v674_v38, %v701_v13  ;;  %490 = vpow2.f32 %v253_v7 }
  0xcd   :  { %v479_v16 = vpop.eup %478  ;;  %492 = vpow2.f32 %v255_v17 }
  0xce   :  { %146 = vadd.xlane.f32.xlu1 %v477_v12  ;;  %104 = vadd.xlane.f32.xlu0 %v479_v16  ;;  %v326_v18 = vmul.f32 1.442695, %v325_v15  ;;  %v481_v20 = vpop.eup %480 }
  0xd0   :  { %494 = vpow2.f32 %v326_v18 }
  0xd1   :  { %v483_v23 = vpop.eup %482 }
  0xd2   :  { %357 = vadd.xlane.f32.xlu1 %v356_v19  ;;  %148 = vadd.xlane.f32.xlu0 %v481_v20  ;;  %v485_v24 = vpop.eup %484 }
  0xd5   :  { %v487_v25 = vpop.eup %486 }
  0xd6   :  { %368 = vadd.xlane.f32.xlu0 %v367_v22  ;;  %189 = vadd.xlane.f32.xlu1 %v483_v23  ;;  %v489_v26 = vpop.eup %488 }
  0xd9   :  { %v491_v29 = vpop.eup %490 }
  0xda   :  { %191 = vadd.xlane.f32.xlu0 %v485_v24  ;;  %223 = vadd.xlane.f32.xlu1 %v487_v25  ;;  %v493_v30 = vpop.eup %492 }
  0xdd   :  { %v495_v33 = vpop.eup %494 }
  0xde   :  { %225 = vadd.xlane.f32.xlu0 %v489_v26  ;;  %257 = vadd.xlane.f32.xlu1 %v491_v29 }
  0xe2   :  { %259 = vadd.xlane.f32.xlu0 %v493_v30  ;;  %328 = vadd.xlane.f32.xlu1 %v495_v33 }
 0x153   :  { %v103_v34 = vpop.xlane.xlu1 %102 }
 0x154   :  { %496 = vrcp.f32 %v103_v34 }
 0x157   :  { %v147_v37 = vpop.xlane.xlu1 %146  ;;  %v105_v39 = vpop.xlane.xlu0 %104 }
 0x158   :  { %498 = vrcp.f32 %v147_v37 }
 0x159   :  { %500 = vrcp.f32 %v105_v39 }
 0x15b   :  { %v149_v40 = vpop.xlane.xlu0 %148  ;;  %v358_v61 = vpop.xlane.xlu1 %357 }
 0x15c   :  { %502 = vrcp.f32 %v149_v40  ;;  %vm361_vm0 = vcmp.eq.f32.partialorder %v358_v61, inf  ;;  %vm363_vm2 = vcmp.eq.f32.partialorder %v358_v61, 0.0 }
 0x15d   :  { %504 = vrsqrt.f32 %v358_v61 }
 0x15f   :  { %v190_v3 = vpop.xlane.xlu1 %189 }
 0x161   :  { %v497_v41 = vpop.eup %496 }
 0x162   :  { %v107_v45 = vmul.f32 %v497_v41, %v475_v4 }
 0x164   :  { %v233_v49 = vmul.f32 %v662_v31, %v107_v45  ;;  %v267_v54 = vmul.f32 %v668_v35, %v107_v45 }
 0x165   :  { %v499_v42 = vpop.eup %498 }
 0x166   :  { %v151_v43 = vmul.f32 %v499_v42, %v477_v12  ;;  %v501_v46 = vpop.eup %500 }
 0x167   :  { %v109_v53 = vmul.f32 %v501_v46, %v479_v16 }
 0x168   :  { %v199_v44 = vmul.f32 %v656_v27, %v151_v43  ;;  %v277_v27 = vmul.f32 %v668_v35, %v151_v43  ;;  %v224_v35 = vpop.xlane.xlu1 %223 }
 0x169   :  { %v503_v47 = vpop.eup %502  ;;  %v234_v55 = vmul.f32 %v664_v32, %v109_v53  ;;  %v268_v58 = vmul.f32 %v670_v36, %v109_v53  ;;  %v369_v32 = vpop.xlane.xlu0 %368 }
 0x16a   :  { %201 = vadd.xlane.f32.xlu0 %v199_v44  ;;  %v153_v48 = vmul.f32 %v503_v47, %v481_v20  ;;  %506 = vrsqrt.f32 %v369_v32  ;;  %v505_v5 = vpop.eup %504  ;;  %vm372_vm1 = vcmp.eq.f32.partialorder %v369_v32, inf  ;;  %vm374_vm3 = vcmp.eq.f32.partialorder %v369_v32, 0.0 }
 0x16b   :  { %v360_v14 = vmul.f32 %v505_v5, %v358_v61  ;;  %508 = vlog2.f32 %v224_v35 }
 0x16c   :  { %v200_v50 = vmul.f32 %v658_v28, %v153_v48  ;;  %v278_v31 = vmul.f32 %v670_v36, %v153_v48  ;;  %v334_v28 = vmul.f32 %v333_v60, %v674_v38  ;;  %v258_v12 = vpop.xlane.xlu1 %257  ;;  %510 = vlog2.f32 %v190_v3 }
 0x16d   :  { %v192_v4 = vpop.xlane.xlu0 %191  ;;  %512 = vlog2.f32 %v258_v12  ;;  %v364_v36 = vand.u32 2147483648, %v358_v61  ;;  %v375_v38 = vand.u32 2147483648, %v369_v32  ;;  %v362_v16 = vsel %vm361_vm0, %v358_v61, %v360_v14 }
 0x16e   :  { %235 = vadd.xlane.f32.xlu0 %v233_v49  ;;  %203 = vadd.xlane.f32.xlu1 %v200_v50 }
 0x16f   :  { %v365_v19 = vsel %vm363_vm2, %v364_v36, %v362_v16 }
 0x170   :  { %v366_v21 = vmax.f32 %v365_v19, 1e-08  ;;  %v329_v23 = vpop.xlane.xlu1 %328 }
 0x171   :  { %v226_v7 = vpop.xlane.xlu0 %225 }
 0x172   :  { %269 = vadd.xlane.f32.xlu0 %v267_v54  ;;  %237 = vadd.xlane.f32.xlu1 %v234_v55  ;;  %514 = vlog2.f32 %v226_v7 }
 0x173   :  { %516 = vlog2.f32 %v192_v4 }
 0x175   :  { %v260_v18 = vpop.xlane.xlu0 %259 }
 0x176   :  { %279 = vadd.xlane.f32.xlu0 %v277_v27  ;;  %271 = vadd.xlane.f32.xlu1 %v268_v58  ;;  %518 = vlog2.f32 %v260_v18 }
 0x177   :  { %v507_v6 = vpop.eup %506  ;;  %520 = vlog2.f32 %v329_v23 }
 0x178   :  { %v371_v15 = vmul.f32 %v507_v6, %v369_v32  ;;  %v509_v24 = vpop.eup %508 }
 0x179   :  { %v511_v25 = vpop.eup %510  ;;  %v228_v33 = vmul.f32 0.6931472, %v509_v24  ;;  %v123_v24 = vrot.slane %v648_v10, 4 }
 0x17a   :  { %354 = vadd.xlane.f32.xlu0 %v353_v59  ;;  %281 = vadd.xlane.f32.xlu1 %v278_v31  ;;  %v373_v17 = vsel %vm372_vm1, %v369_v32, %v371_v15  ;;  %v513_v29 = vpop.eup %512  ;;  %v194_v37 = vmul.f32 0.6931472, %v511_v25  ;;  %v167_v25 = vrot.slane %v650_v11, 4 }
 0x17b   :  { %v376_v20 = vsel %vm374_vm3, %v375_v38, %v373_v17  ;;  %v262_v39 = vmul.f32 0.6931472, %v513_v29  ;;  %v231_v44 = vadd.f32 %v228_v33, %v685_v56  ;;  %v124_v29 = vadd.f32 %v123_v24, %v648_v10 }
 0x17c   :  { %v377_v22 = vmax.f32 %v376_v20, 1e-08  ;;  %v197_v46 = vadd.f32 %v194_v37, %v677_v51 }
 0x17d   :  { %v265_v48 = vadd.f32 %v262_v39, %v693_v62  ;;  %v125_v37 = vrot.slane %v124_v29, 2 }
 0x17e   :  { %335 = vadd.xlane.f32.xlu1 %v334_v28  ;;  %v378_v26 = vmul.f32 %v377_v22, %v366_v21 }
 0x17f   :  { %v515_v34 = vpop.eup %514 }
 0x180   :  { %522 = vrcp.f32 %v378_v26  ;;  %v517_v40 = vpop.eup %516  ;;  %v230_v45 = vmul.f32 0.6931472, %v515_v34  ;;  %v113_v26 = vrot.slane %v635_v1, 4 }
 0x181   :  { %v196_v49 = vmul.f32 0.6931472, %v517_v40 }
 0x182   :  { %v232_v58 = vadd.f32 %v230_v45, %v687_v57  ;;  %v114_v33 = vadd.f32 %v113_v26, %v635_v1  ;;  %v316_v26 = vstv %s454_s28 }
 0x183   :  { %v519_v42 = vpop.eup %518  ;;  %v198_v60 = vadd.f32 %v196_v49, %v679_v52 }
 0x184   :  { %v264_v50 = vmul.f32 0.6931472, %v519_v42  ;;  %v521_v61 = vpop.eup %520  ;;  %v115_v40 = vrot.slane %v114_v33, 2  ;;  %v126_v42 = vadd.f32 %v125_v37, %v124_v29  ;;  %v319_v29 = vstv %s455_s30 }
 0x185   :  { %v331_v6 = vmul.f32 0.6931472, %v521_v61 }
 0x186   :  { %v266_v56 = vadd.f32 %v264_v50, %v695_v63  ;;  %v399_v50 = vstv %s458_s26 }
 0x187   :  { %v332_v16 = vadd.f32 %v331_v6, %v701_v13  ;;  %v157_v13 = vrot.slane %v637_v2, 4 }
 0x189   :  { %v158_v34 = vadd.f32 %v157_v13, %v637_v2 }
 0x18d   :  { %v523_v5 = vpop.eup %522 }
 0x1f3   :  { %v202_v30 = vpop.xlane.xlu0 %201 }
 0x1f4   :  { %v205_v54 = vsub.f32 %v197_v46, %v202_v30  ;;  %v168_v30 = vadd.f32 %v167_v25, %v650_v11  ;;  %v127_v46 = vrot.slane %v126_v42, 1 }
 0x1f6   :  { %v169_v39 = vrot.slane %v168_v30, 2  ;;  %v128_v10 = vadd.f32 %v127_v46, %v126_v42 }
 0x1f7   :  { %v236_v41 = vpop.xlane.xlu0 %235  ;;  %v204_v43 = vpop.xlane.xlu1 %203 }
 0x1f8   :  { %v239_v47 = vsub.f32 %v231_v44, %v236_v41  ;;  %v206_v62 = vsub.f32 %v198_v60, %v204_v43  ;;  %v159_v41 = vrot.slane %v158_v34, 2  ;;  %v170_v43 = vadd.f32 %v169_v39, %v168_v30 }
 0x1f9   :  { %v116_v44 = vadd.f32 %v115_v40, %v114_v33  ;;  %v349_v30 = vstv %s456_s29  ;;  %v394_v39 = vstv %s457_s4 }
 0x1fa   :  { %v241_v59 = vadd.f32 %v239_v47, %v205_v54  ;;  %v160_v45 = vadd.f32 %v159_v41, %v158_v34  ;;  %v171_v47 = vrot.slane %v170_v43, 1  ;;  %v734_v54 = vand.u32 127, %v67_v0 }
 0x1fb   :  { %v270_v53 = vpop.xlane.xlu0 %269  ;;  %v238_v55 = vpop.xlane.xlu1 %237 }
 0x1fc   :  { %v273_v27 = vsub.f32 %v265_v48, %v270_v53  ;;  %v240_v31 = vsub.f32 %v232_v58, %v238_v55  ;;  %v161_v49 = vrot.slane %v160_v45, 1  ;;  %v172_v11 = vadd.f32 %v171_v47, %v170_v43 }
 0x1fd   :  { %v400_v55 = vmul.f32 %v399_v50, %v644_v8  ;;  %v402_v58 = vstv %s459_s27  ;;  %vm401_vm5 = vcmp.lt.s32.totalorder %v734_v54, 64  ;;  %vm407_vm6 = vcmp.lt.s32.totalorder %v734_v54, 16 }
 0x1fe   :  { %v275_v51 = vadd.f32 %v273_v27, %v241_v59  ;;  %v242_v7 = vadd.f32 %v240_v31, %v206_v62  ;;  %v162_v53 = vadd.f32 %v161_v49, %v160_v45  ;;  %v173_v27 = vadd.f32 %v172_v11, %v128_v10 }
 0x1ff   :  { %v280_v28 = vpop.xlane.xlu0 %279  ;;  %v272_v32 = vpop.xlane.xlu1 %271  ;;  %v406_v59 = vmul.f32 %v399_v50, %v646_v9  ;;  %vm411_vm7 = vcmp.eq.s32.totalorder %v734_v54, 0  ;;  %vm413_vm8 = vcmp.eq.s32.totalorder %v734_v54, 1  ;;  %vm416_vm9 = vcmp.eq.s32.totalorder %v734_v54, 2 }
 0x200   :  { %v283_v3 = vsub.f32 %v265_v48, %v280_v28  ;;  %v274_v4 = vsub.f32 %v266_v56, %v272_v32  ;;  %v117_v48 = vrot.slane %v116_v44, 1  ;;  %v408_v31 = vmul.f32 %v402_v58, %v173_v27 }
 0x201   :  { %vm419_vm10 = vcmp.eq.s32.totalorder %v734_v54, 3  ;;  %vm422_vm11 = vcmp.eq.s32.totalorder %v734_v54, 4 }
 0x202   :  { %v285_v35 = vadd.f32 %v283_v3, %v275_v51  ;;  %v276_v15 = vadd.f32 %v274_v4, %v242_v7  ;;  %v118_v1 = vadd.f32 %v117_v48, %v116_v44  ;;  %v409_v61 = vsel %vm407_vm6, %v408_v31, 0.0 }
 0x203   :  { %v355_v12 = vpop.xlane.xlu0 %354  ;;  %v282_v57 = vpop.xlane.xlu1 %281  ;;  %v742_v51 = vadd.f32 %v409_v61, %v406_v59 }
 0x204   :  { %v380_v14 = vmul.f32 %v523_v5, %v355_v12  ;;  %v290_v52 = vsel %vm289_vm4, %v285_v35, 0.0  ;;  %v284_v36 = vsub.f32 %v266_v56, %v282_v57  ;;  %v163_v2 = vadd.f32 %v162_v53, %v118_v1 }
 0x205   :  { %293 = vadd.xlane.f32.xlu0 %v290_v52 }
 0x206   :  { %v286_v63 = vadd.f32 %v284_v36, %v276_v15  ;;  %v381_v38 = vsub.f32 0.4, %v380_v14  ;;  %v403_v60 = vmul.f32 %v402_v58, %v163_v2 }
 0x207   :  { %v336_v17 = vpop.xlane.xlu1 %335 }
 0x208   :  { %v337_v18 = vsub.f32 %v332_v16, %v336_v17  ;;  %v304_v19 = vsel %vm289_vm4, %v286_v63, 0.0  ;;  %v382_v21 = vmax.f32 %v381_v38, 0.0  ;;  %v404_v56 = vsel %vm401_vm5, %v403_v60, 0.0 }
 0x209   :  { %v305_v20 = vadd.f32 %v304_v19, %v290_v52  ;;  %v740_v28 = vadd.f32 %v404_v56, %v400_v55  ;;  %v429_v55 = vrot.slane %v742_v51, 6 }
 0x20a   :  { %v338_v22 = vsel %vm289_vm4, %v337_v18, 0.0  ;;  %v383_v23 = vsel %vm289_vm4, %v382_v21, 0.0 }
 0x20b   :  { %339 = vadd.xlane.f32.xlu0 %v338_v22  ;;  %306 = vadd.xlane.f32.xlu1 %v305_v20  ;;  %v426_v53 = vrot.slane %v740_v28, 7 }
 0x20f   :  { %384 = vadd.xlane.f32.xlu1 %v383_v23 }
 0x28e   :  { %v294_v0 = vpop.xlane.xlu0 %293 }
 0x28f   :  { %v295_v32 = vrot.slane %v294_v0, 4 }
 0x291   :  { %v296_v3 = vadd.f32 %v295_v32, %v294_v0 }
 0x293   :  { %v297_v8 = vrot.slane %v296_v3, 2 }
 0x294   :  { %v307_v62 = vpop.xlane.xlu1 %306  ;;  %v340_v4 = vpop.xlane.xlu0 %339 }
 0x295   :  { %v298_v35 = vadd.f32 %v297_v8, %v296_v3  ;;  %v308_v9 = vrot.slane %v307_v62, 4  ;;  %v341_v5 = vrot.slane %v340_v4, 4 }
 0x297   :  { %v299_v6 = vrot.slane %v298_v35, 1  ;;  %v309_v7 = vadd.f32 %v308_v9, %v307_v62  ;;  %v342_v12 = vadd.f32 %v341_v5, %v340_v4 }
 0x298   :  { %v385_v57 = vpop.xlane.xlu1 %384 }
 0x299   :  { %v300_v14 = vadd.f32 %v299_v6, %v298_v35  ;;  %v310_v52 = vrot.slane %v309_v7, 2  ;;  %v343_v15 = vrot.slane %v342_v12, 2  ;;  %v386_v36 = vrot.slane %v385_v57, 4 }
 0x29b   :  { %460 = vpush %v300_v14  ;;  %v344_v63 = vadd.f32 %v343_v15, %v342_v12  ;;  %v387_v38 = vadd.f32 %v386_v36, %v385_v57  ;;  %v311_v16 = vadd.f32 %v310_v52, %v309_v7 }
 0x29d   :  { %v388_v17 = vrot.slane %v387_v38, 2  ;;  %v312_v18 = vrot.slane %v311_v16, 1  ;;  %v345_v19 = vrot.slane %v344_v63, 1 }
 0x29f   :  { %v389_v20 = vadd.f32 %v388_v17, %v387_v38  ;;  %v313_v21 = vadd.f32 %v312_v18, %v311_v16  ;;  %v346_v22 = vadd.f32 %v345_v19, %v344_v63 }
 0x2a1   :  { %462 = vpush %v313_v21  ;;  %v390_v23 = vrot.slane %v389_v20, 1 }
 0x2a2   :  { %464 = vpush %v346_v22 }
 0x2a3   :  { %v391_v24 = vadd.f32 %v390_v23, %v389_v20 }
 0x2a5   :  { %466 = vpush %v391_v24 }
 0x2cc   :  { %s461_s5 = spop %460 }
 0x2cd   :  { %v302_v25 = vstv %s461_s5 }
 0x2ce   :  { %v317_v33 = vmul.f32 %v316_v26, %v302_v25 }
 0x2d0   :  { %v412_v43 = vsel %vm411_vm7, %v317_v33, 0.0 }
 0x2d2   :  { %s463_s6 = spop %462 }
 0x2d3   :  { %v315_v13 = vstv %s463_s6  ;;  %s465_s7 = spop %464 }
 0x2d4   :  { %v318_v34 = vsub.f32 %v315_v13, %v302_v25  ;;  %v348_v37 = vstv %s465_s7 }
 0x2d5   :  { %v350_v41 = vmul.f32 %v349_v30, %v348_v37 }
 0x2d6   :  { %v320_v40 = vmul.f32 %v319_v29, %v318_v34  ;;  %s467_s8 = spop %466 }
 0x2d7   :  { %v393_v42 = vstv %s467_s8  ;;  %v417_v49 = vsel %vm416_vm9, %v350_v41, 0.0 }
 0x2d8   :  { %v414_v44 = vsel %vm413_vm8, %v320_v40, 0.0  ;;  %v396_v45 = vadd.f32 %v320_v40, %v317_v33  ;;  %v395_v46 = vmul.f32 %v394_v39, %v393_v42 }
 0x2d9   :  { %v415_v47 = vadd.f32 %v414_v44, %v412_v43 }
 0x2da   :  { %v397_v48 = vadd.f32 %v396_v45, %v350_v41  ;;  %v420_v50 = vsel %vm419_vm10, %v395_v46, 0.0 }
 0x2db   :  { %v418_v10 = vadd.f32 %v417_v49, %v415_v47 }
 0x2dc   :  { %v398_v11 = vadd.f32 %v397_v48, %v395_v46 }
 0x2dd   :  { %v421_v1 = vadd.f32 %v420_v50, %v418_v10 }
 0x2de   :  { %v423_v2 = vsel %vm422_vm11, %v398_v11, 0.0 }
 0x2df   :  { %v424_v27 = vadd.f32 %v423_v2, %v421_v1 }
 0x2e1   :  { %v432_v58 = vsel %vm431_vm12, %v424_v27, %v426_v53 }
 0x2e2   :  { %v434_v59 = vsel %vm433_vm13, %v432_v58, %v429_v55 }
 0x2e3   :  { %435 = vst [vmem:[#allocation9] sm:$0x7] %v434_v59 }
 0x2e4   :  { %583 = shalt.err (!%p580_p0)
}
 0x2e5   :  { %445 = dma.vmem_to_hbm [thread:$0]  %s443_s10, 64, %s757_s3, [#allocation4]  }
 0x2e6   :  { %598 = dma.done.wait [#allocation4], 64  }
 0x2e7   :  { %599 = vsyncadd [#allocation4], 4294967232 }
 0x2e8   :  { %449 = vsyncpa [#allocation3], 1 }
 0x2e9   :  { %450 = vsyncpa [#allocation8], 1 }
 0x2ea   :  { %451 = vsyncpa [#allocation4], 1 }
 0x2eb   :  { %452 = vsyncpa [#allocation5], 1 }

</bundles_post_ra>
